<compile_context>
chip_gen: v5e
topology: v5e:2x2
jax: 0.10.0
libtpu: 0.0.40
codegen_flags: <defaults>
</compile_context>

<pallas_src>
import numpy as np
import jax
import jax.numpy as jnp
from jax import lax
from jax.experimental import pallas as pl
from jax.experimental.pallas import tpu as pltpu


# ------------------- kernel 1: encoder MLP + x @ W_ih + b ------------------- #

def _make_encoder_kernel(n_dense):
    """Fused encoder MLP (all tanh) followed by the LSTM input projection."""
    def kernel(x_ref, *refs):
        o_ref = refs[-1]
        y = x_ref[...]
        for i in range(n_dense):
            w = refs[2 * i][...]
            b = refs[2 * i + 1][...]
            y = jnp.tanh(jnp.dot(y, w, preferred_element_type=jnp.float32) + b)
        w_ih = refs[2 * n_dense][...]
        b_lstm = refs[2 * n_dense + 1][...]
        o_ref[...] = (jnp.dot(y, w_ih, preferred_element_type=jnp.float32)
                      + b_lstm)
    return kernel


def encoder_gates(obs, enc_layers, w_ih_t, lstm_bias):
    """gates_x = encoder(obs) @ W_ih^T + (b_ih + b_hh), shape (N, 4H)."""
    N, ob_dim = obs.shape
    G = w_ih_t.shape[1]
    # Row tiling: large parallel tiles for big batches, one padded tile else.
    tm = 256 if N >= 256 else max(8, ((N + 7) // 8) * 8)
    n_pad = ((N + tm - 1) // tm) * tm
    if n_pad != N:
        obs = jnp.pad(obs, ((0, n_pad - N), (0, 0)))

    flat_w = []
    in_specs = [pl.BlockSpec((tm, ob_dim), lambda i: (i, 0))]
    for w, b in enc_layers:
        flat_w += [w, b]
        in_specs += [pl.BlockSpec(w.shape, lambda i: (0, 0)),
                     pl.BlockSpec(b.shape, lambda i: (0, 0))]
    flat_w += [w_ih_t, lstm_bias]
    in_specs += [pl.BlockSpec(w_ih_t.shape, lambda i: (0, 0)),
                 pl.BlockSpec(lstm_bias.shape, lambda i: (0, 0))]

    out = pl.pallas_call(
        _make_encoder_kernel(len(enc_layers)),
        out_shape=jax.ShapeDtypeStruct((n_pad, G), jnp.float32),
        grid=(n_pad // tm,),
        in_specs=in_specs,
        out_specs=pl.BlockSpec((tm, G), lambda i: (i, 0)),
        compiler_params=pltpu.CompilerParams(
            dimension_semantics=("parallel",)),
    )(obs, *flat_w)
    return out[:N]


# ------------------- kernel 2: LSTM recurrence + decoder -------------------- #

def _make_lstm_decoder_kernel(T, B, H, n_dec_hidden):
    G = 4 * H

    def kernel(gx_ref, whh_ref, *refs):
        n_w = 2 * (n_dec_hidden + 1)
        dec_refs = refs[:n_w]
        o_ref = refs[n_w]
        h_state = refs[n_w + 1]     # (B, 4H); only lanes < H are meaningful
        c_state = refs[n_w + 2]     # (B, 4H); only lanes < H are meaningful
        h_all = refs[n_w + 3]       # (T*B, 4H) time-major flat hidden states

        h_state[...] = jnp.zeros_like(h_state)
        c_state[...] = jnp.zeros_like(c_state)

        whh = whh_ref[...]                                  # (4H,4H), rows>=H zero
        lane = lax.broadcasted_iota(jnp.int32, (B, G), 1)
        is_g = (lane >= 2 * H) & (lane < 3 * H)

        @pl.loop(0, T)
        def _(t):
            gx = gx_ref[t]                                  # (B, 4H) = x@W_ih + b
            h = h_state[...]
            gates = gx + jnp.dot(h, whh, preferred_element_type=jnp.float32)
            # full-vreg transcendentals; lanes: [sig(i) | sig(f) | tanh(g) | sig(o)]
            act = jnp.where(is_g, jnp.tanh(gates), jax.nn.sigmoid(gates))
            f_a = pltpu.roll(act, shift=3 * H, axis=1)      # lanes < H hold f
            g_a = pltpu.roll(act, shift=2 * H, axis=1)      # lanes < H hold g
            o_a = pltpu.roll(act, shift=H, axis=1)          # lanes < H hold o
            c = f_a * c_state[...] + act * g_a              # valid in lanes < H
            h_new = o_a * jnp.tanh(c)                       # valid in lanes < H
            c_state[...] = c
            h_state[...] = h_new
            h_all[pl.ds(t * B, B), :] = h_new

        # Fused decoder on all timesteps at once (one batched matmul chain);
        # padded-timestep rows are finite garbage discarded by the caller.
        y = h_all[...]                                      # (T*B, 4H)
        for i in range(n_dec_hidden):
            w = dec_refs[2 * i][...]
            b = dec_refs[2 * i + 1][...]
            y = jnp.tanh(jnp.dot(y, w, preferred_element_type=jnp.float32) + b)
        w = dec_refs[2 * n_dec_hidden][...]
        b = dec_refs[2 * n_dec_hidden + 1][...]
        o_ref[...] = jnp.dot(y, w, preferred_element_type=jnp.float32) + b

    return kernel


def lstm_decoder(gx_pad, w_hh_pad, dec_layers_padded):
    """gx_pad: (T, B, 4H) time-major gates; returns (T*B, 1) decoder output."""
    T, B, G = gx_pad.shape
    H = G // 4
    n_dec_hidden = len(dec_layers_padded) - 1

    flat_w = []
    in_specs = [pl.BlockSpec((T, B, G), lambda i: (0, 0, 0)),
                pl.BlockSpec((G, G), lambda i: (0, 0))]
    for w, b in dec_layers_padded:
        flat_w += [w, b]
        in_specs += [pl.BlockSpec(w.shape, lambda i: (0, 0)),
                     pl.BlockSpec(b.shape, lambda i: (0, 0))]

    return pl.pallas_call(
        _make_lstm_decoder_kernel(T, B, H, n_dec_hidden),
        out_shape=jax.ShapeDtypeStruct((T * B, 1), jnp.float32),
        grid=(1,),
        in_specs=in_specs,
        out_specs=pl.BlockSpec((T * B, 1), lambda i: (0, 0)),
        scratch_shapes=[
            pltpu.VMEM((B, G), jnp.float32),      # h state (128-lane wide)
            pltpu.VMEM((B, G), jnp.float32),      # c state
            pltpu.VMEM((T * B, G), jnp.float32),  # all per-step h, time-major
        ],
        compiler_params=pltpu.CompilerParams(
            dimension_semantics=("arbitrary",)),
    )(gx_pad, w_hh_pad, *flat_w)


# ------------------------- parameters (deterministic) ----------------------- #

def _uniform(key, shape, bound):
    return jax.random.uniform(key, shape, jnp.float32, -bound, bound)


def init_params(key, ob_dim, size, lstm_size, enc_n_layers, dec_n_layers):
    keys = iter(jax.random.split(key, 64))
    params = {}

    # encoder: ob_dim -> [size]*enc_n_layers -> lstm_size, all tanh
    enc = []
    in_dim = ob_dim
    for _ in range(enc_n_layers):
        bnd = 1.0 / np.sqrt(in_dim)
        enc.append((_uniform(next(keys), (in_dim, size), bnd),
                    _uniform(next(keys), (1, size), bnd)))
        in_dim = size
    bnd = 1.0 / np.sqrt(in_dim)
    enc.append((_uniform(next(keys), (in_dim, lstm_size), bnd),
                _uniform(next(keys), (1, lstm_size), bnd)))
    params["encoder"] = enc

    # LSTM(lstm_size, lstm_size): weights pre-transposed (H, 4H), PyTorch gate
    # order (i|f|g|o); bias = b_ih + b_hh as (1, 4H).
    bnd = 1.0 / np.sqrt(lstm_size)
    params["lstm"] = dict(
        w_ih_t=_uniform(next(keys), (lstm_size, 4 * lstm_size), bnd),
        w_hh_t=_uniform(next(keys), (lstm_size, 4 * lstm_size), bnd),
        bias=(_uniform(next(keys), (1, 4 * lstm_size), bnd)
              + _uniform(next(keys), (1, 4 * lstm_size), bnd)),
    )

    # decoder: lstm_size -> [size]*dec_n_layers (tanh) -> 1 (identity)
    dec = []
    in_dim = lstm_size
    for _ in range(dec_n_layers):
        bnd = 1.0 / np.sqrt(in_dim)
        dec.append((_uniform(next(keys), (in_dim, size), bnd),
                    _uniform(next(keys), (1, size), bnd)))
        in_dim = size
    bnd = 1.0 / np.sqrt(in_dim)
    dec.append((_uniform(next(keys), (in_dim, 1), bnd),
                _uniform(next(keys), (1, 1), bnd)))
    params["decoder"] = dec
    return params


# ------------------------------- forward pass ------------------------------- #

def rnn_group_critic_forward(params, obs, trajectory_len):
    """obs: (N_total, ob_dim) flat timesteps; trajectory_len: python list of
    trajectory lengths (sorted descending, as pack_padded_sequence requires)."""
    lengths = [int(l) for l in trajectory_len]
    B, T = len(lengths), max(lengths)
    H = params["lstm"]["w_hh_t"].shape[0]
    G = 4 * H

    # Fused encoder MLP + LSTM input projection on the flat timesteps.
    gates_flat = encoder_gates(obs, params["encoder"],
                               params["lstm"]["w_ih_t"],
                               params["lstm"]["bias"])          # (N, 4H)

    # flat -> zero-padded TIME-MAJOR (T, B, 4H); static indices, no transpose.
    batch_idx = np.concatenate(
        [np.full(l, b, np.int32) for b, l in enumerate(lengths)])
    time_idx = np.concatenate(
        [np.arange(l, dtype=np.int32) for l in lengths])
    gx_pad = jnp.zeros((T, B, G), jnp.float32).at[time_idx, batch_idx].set(
        gates_flat)

    # Zero-pad W_hh / first decoder weight to 4H input rows so the LSTM state
    # can stay a full 128-lane vreg (no lane slicing on the serial path).
    w_hh_pad = jnp.zeros((G, G), jnp.float32).at[:H, :].set(
        params["lstm"]["w_hh_t"])
    dec = params["decoder"]
    wd0, bd0 = dec[0]
    wd0_pad = jnp.zeros((G, wd0.shape[1]), jnp.float32).at[:H, :].set(wd0)
    dec_padded = [(wd0_pad, bd0)] + list(dec[1:])

    out_tb1 = lstm_decoder(gx_pad, w_hh_pad, dec_padded)        # (T*B, 1)

    # padded (time-major) -> flat valid timesteps (pad_packed + flat + squeeze)
    flat_idx = jnp.asarray(time_idx * B + batch_idx)
    return out_tb1[flat_idx, 0]


# -------------------------- pure-JAX reference ------------------------------ #

def reference_forward(params, obs, trajectory_len):
    x = obs
    for w, b in params["encoder"]:
        x = jnp.tanh(jnp.dot(x, w) + b)
    H = x.shape[1]
    outs, start = [], 0
    for l in trajectory_len:
        seq = x[start:start + l]
        h = jnp.zeros((H,), jnp.float32)
        c = jnp.zeros((H,), jnp.float32)
        seq_out = []
        for t in range(l):
            gates = (seq[t] @ params["lstm"]["w_ih_t"]
                     + h @ params["lstm"]["w_hh_t"] + params["lstm"]["bias"][0])
            i = jax.nn.sigmoid(gates[0 * H:1 * H])
            f = jax.nn.sigmoid(gates[1 * H:2 * H])
            g = jnp.tanh(gates[2 * H:3 * H])
            o = jax.nn.sigmoid(gates[3 * H:4 * H])
            c = f * c + i * g
            h = o * jnp.tanh(c)
            seq_out.append(h)
        outs.append(jnp.stack(seq_out))
        start += l
    y = jnp.concatenate(outs, axis=0)
    dec = params["decoder"]
    for w, b in dec[:-1]:
        y = jnp.tanh(jnp.dot(y, w) + b)
    w, b = dec[-1]
    y = jnp.dot(y, w) + b
    return y[:, 0]


# ----------------------------------- main ----------------------------------- #

if __name__ == "__main__":
    hparams = dict(
        n_agents=2,
        ob_dim=6,
        layer_size_per_agent=16,        # size = 32
        lstm_layer_size_per_agent=16,   # lstm_size = 32
        encoder_n_layers=1,
        decoder_n_layers=1,
        rnn=True,
    )
    size = hparams["layer_size_per_agent"] * hparams["n_agents"]
    lstm_size = hparams["lstm_layer_size_per_agent"] * hparams["n_agents"]

    key = jax.random.PRNGKey(0)
    kp, kx = jax.random.split(key)
    params = init_params(kp, hparams["ob_dim"], size, lstm_size,
                         hparams["encoder_n_layers"],
                         hparams["decoder_n_layers"])

    trajectory_len = [8, 6]             # sorted descending (enforce_sorted=True)
    n_total = sum(trajectory_len)
    obs = jax.random.normal(kx, (n_total, hparams["ob_dim"]), jnp.float32)

    out = rnn_group_critic_forward(params, obs, trajectory_len)
    out = jax.block_until_ready(out)

    ref = reference_forward(params, obs, trajectory_len)
    assert out.shape == (n_total,)
    np.testing.assert_allclose(np.asarray(out), np.asarray(ref),
                               rtol=2e-3, atol=2e-3)
    print("KERNEL_OK")
</pallas_src>

<mosaic_0001>
module attributes {stable_mosaic.version = 11 : i64} {
  func.func @kernel(%arg0: i32, %arg1: memref<16x6xf32, #tpu.memory_space<vmem>>, %arg2: memref<6x32xf32, #tpu.memory_space<vmem>>, %arg3: memref<1x32xf32, #tpu.memory_space<vmem>>, %arg4: memref<32x32xf32, #tpu.memory_space<vmem>>, %arg5: memref<1x32xf32, #tpu.memory_space<vmem>>, %arg6: memref<32x128xf32, #tpu.memory_space<vmem>>, %arg7: memref<1x128xf32, #tpu.memory_space<vmem>>, %arg8: memref<16x128xf32, #tpu.memory_space<vmem>>) attributes {dimension_semantics = [#tpu.dimension_semantics<parallel>], iteration_bounds = array<i64: 1>, scalar_prefetch = 0 : i64, scratch_operands = 0 : i64, tpu.core_type = #tpu.core_type<tc>, window_params = [{transform_indices = @transform_0, window_bounds = array<i64: 16, 6>}, {pipeline_mode = #tpu.pipeline_mode<synchronous>, transform_indices = @transform_1, window_bounds = array<i64: 6, 32>}, {pipeline_mode = #tpu.pipeline_mode<synchronous>, transform_indices = @transform_2, window_bounds = array<i64: 1, 32>}, {pipeline_mode = #tpu.pipeline_mode<synchronous>, transform_indices = @transform_3, window_bounds = array<i64: 32, 32>}, {pipeline_mode = #tpu.pipeline_mode<synchronous>, transform_indices = @transform_4, window_bounds = array<i64: 1, 32>}, {pipeline_mode = #tpu.pipeline_mode<synchronous>, transform_indices = @transform_5, window_bounds = array<i64: 32, 128>}, {pipeline_mode = #tpu.pipeline_mode<synchronous>, transform_indices = @transform_6, window_bounds = array<i64: 1, 128>}, {transform_indices = @transform_7, window_bounds = array<i64: 16, 128>}]} {
    %c0 = arith.constant 0 : index
    %c0_0 = arith.constant 0 : index
    %0 = vector.load %arg1[%c0, %c0_0] : memref<16x6xf32, #tpu.memory_space<vmem>>, vector<16x6xf32>
    %c0_1 = arith.constant 0 : index
    %c0_2 = arith.constant 0 : index
    %1 = vector.load %arg2[%c0_1, %c0_2] : memref<6x32xf32, #tpu.memory_space<vmem>>, vector<6x32xf32>
    %c0_3 = arith.constant 0 : index
    %c0_4 = arith.constant 0 : index
    %2 = vector.load %arg3[%c0_3, %c0_4] : memref<1x32xf32, #tpu.memory_space<vmem>>, vector<1x32xf32>
    %cst = arith.constant dense<0.000000e+00> : vector<16x32xf32>
    %3 = tpu.matmul %0, %1, %cst {dimension_numbers = #tpu.dot_dimension_numbers<[1], [0], [0], [1], [0, 0, 1, 1], [], []>} : vector<16x6xf32>, vector<6x32xf32>, vector<16x32xf32> -> vector<16x32xf32>
    %4 = vector.broadcast %2 : vector<1x32xf32> to vector<16x32xf32>
    %5 = arith.addf %3, %4 : vector<16x32xf32>
    %6 = math.tanh %5 : vector<16x32xf32>
    %c0_5 = arith.constant 0 : index
    %c0_6 = arith.constant 0 : index
    %7 = vector.load %arg4[%c0_5, %c0_6] : memref<32x32xf32, #tpu.memory_space<vmem>>, vector<32x32xf32>
    %c0_7 = arith.constant 0 : index
    %c0_8 = arith.constant 0 : index
    %8 = vector.load %arg5[%c0_7, %c0_8] : memref<1x32xf32, #tpu.memory_space<vmem>>, vector<1x32xf32>
    %cst_9 = arith.constant dense<0.000000e+00> : vector<16x32xf32>
    %9 = tpu.matmul %6, %7, %cst_9 {dimension_numbers = #tpu.dot_dimension_numbers<[1], [0], [0], [1], [0, 0, 1, 1], [], []>} : vector<16x32xf32>, vector<32x32xf32>, vector<16x32xf32> -> vector<16x32xf32>
    %10 = vector.broadcast %8 : vector<1x32xf32> to vector<16x32xf32>
    %11 = arith.addf %9, %10 : vector<16x32xf32>
    %12 = math.tanh %11 : vector<16x32xf32>
    %c0_10 = arith.constant 0 : index
    %c0_11 = arith.constant 0 : index
    %13 = vector.load %arg6[%c0_10, %c0_11] : memref<32x128xf32, #tpu.memory_space<vmem>>, vector<32x128xf32>
    %c0_12 = arith.constant 0 : index
    %c0_13 = arith.constant 0 : index
    %14 = vector.load %arg7[%c0_12, %c0_13] : memref<1x128xf32, #tpu.memory_space<vmem>>, vector<1x128xf32>
    %cst_14 = arith.constant dense<0.000000e+00> : vector<16x128xf32>
    %15 = tpu.matmul %12, %13, %cst_14 {dimension_numbers = #tpu.dot_dimension_numbers<[1], [0], [0], [1], [0, 0, 1, 1], [], []>} : vector<16x32xf32>, vector<32x128xf32>, vector<16x128xf32> -> vector<16x128xf32>
    %16 = vector.broadcast %14 : vector<1x128xf32> to vector<16x128xf32>
    %17 = arith.addf %15, %16 : vector<16x128xf32>
    %c0_15 = arith.constant 0 : index
    %c0_16 = arith.constant 0 : index
    %18 = vector.load %arg8[%c0_15, %c0_16] : memref<16x128xf32, #tpu.memory_space<vmem>>, vector<16x128xf32>
    tpu.vector_store %arg8[%c0_15, %c0_16], %17 {strides = array<i32>} : memref<16x128xf32, #tpu.memory_space<vmem>>, vector<16x128xf32>,
    return
  }
  func.func @transform_0(%arg0: i32) -> (i32, i32) {
    %c0_i32 = arith.constant 0 : i32
    %c0_i32_0 = arith.constant 0 : i32
    return %arg0, %c0_i32 : i32, i32
  }
  func.func @transform_1(%arg0: i32) -> (i32, i32) {
    %c0_i32 = arith.constant 0 : i32
    %c0_i32_0 = arith.constant 0 : i32
    %c0_i32_1 = arith.constant 0 : i32
    return %c0_i32, %c0_i32_0 : i32, i32
  }
  func.func @transform_2(%arg0: i32) -> (i32, i32) {
    %c0_i32 = arith.constant 0 : i32
    %c0_i32_0 = arith.constant 0 : i32
    %c0_i32_1 = arith.constant 0 : i32
    return %c0_i32, %c0_i32_0 : i32, i32
  }
  func.func @transform_3(%arg0: i32) -> (i32, i32) {
    %c0_i32 = arith.constant 0 : i32
    %c0_i32_0 = arith.constant 0 : i32
    %c0_i32_1 = arith.constant 0 : i32
    return %c0_i32, %c0_i32_0 : i32, i32
  }
  func.func @transform_4(%arg0: i32) -> (i32, i32) {
    %c0_i32 = arith.constant 0 : i32
    %c0_i32_0 = arith.constant 0 : i32
    %c0_i32_1 = arith.constant 0 : i32
    return %c0_i32, %c0_i32_0 : i32, i32
  }
  func.func @transform_5(%arg0: i32) -> (i32, i32) {
    %c0_i32 = arith.constant 0 : i32
    %c0_i32_0 = arith.constant 0 : i32
    %c0_i32_1 = arith.constant 0 : i32
    return %c0_i32, %c0_i32_0 : i32, i32
  }
  func.func @transform_6(%arg0: i32) -> (i32, i32) {
    %c0_i32 = arith.constant 0 : i32
    %c0_i32_0 = arith.constant 0 : i32
    %c0_i32_1 = arith.constant 0 : i32
    return %c0_i32, %c0_i32_0 : i32, i32
  }
  func.func @transform_7(%arg0: i32) -> (i32, i32) {
    %c0_i32 = arith.constant 0 : i32
    %c0_i32_0 = arith.constant 0 : i32
    return %arg0, %c0_i32 : i32, i32
  }
}

</mosaic_0001>

<bundles_post_ra>
// kernel: tpu_custom_call.1
= control target key start
LH: loop header
LB: loop body
LE: loop exit
PB: predicated region body
PF: predicated region fallthrough
CT: control target
= control target key end

     0   :  { %12 = vsyncpa [#allocation3], 0  ;;  %s391_s0 = inlined_call_operand.vmem [shape: f32[16,6], index: 0, kind: input, shape index: {}]   ;;  %s392_s1 = inlined_call_operand.vmem [shape: f32[6,32], index: 1, kind: input, shape index: {}]   ;;  %s393_s2 = inlined_call_operand.vmem [shape: f32[1,32], index: 2, kind: input, shape index: {}]   ;;  %s394_s3 = inlined_call_operand.hbm [shape: f32[32,32], index: 3, kind: input, shape index: {}]   ;;  %s395_s4 = inlined_call_operand.vmem [shape: f32[1,32], index: 4, kind: input, shape index: {}]   ;;  %s396_s5 = inlined_call_operand.hbm [shape: f32[32,128], index: 5, kind: input, shape index: {}]   ;;  %s397_s6 = inlined_call_operand.vmem [shape: f32[1,128], index: 6, kind: input, shape index: {}]   ;;  %s398_s7 = inlined_call_operand.hbm [shape: f32[16,128], index: 7, kind: output, shape index: {}]  }
   0x1   :  { %13 = vsyncpa [#allocation6], 0 }
   0x2   :  { %14 = vsyncpa [#allocation4], 0  ;;  %s25_s26 = sshll.u32 %s394_s3, 4  ;;  %s306_s27 = smov [#allocation2]   ;;  %s26_s26 = int_to_ptr.hbm [resolvable:$true] %s25_s26 }
   0x3   :  { %s27_s28 = sshll.u32 %s306_s27, 4  ;;  %s40_s8 = sshll.u32 %s396_s5, 4  ;;  %s28_s28 = int_to_ptr.vmem [resolvable:$true] %s27_s28  ;;  %s41_s8 = int_to_ptr.hbm [resolvable:$true] %s40_s8 }
   0x4   :  { %s307_s9 = smov 128   ;;  %s308_s10 = smov 8  }
   0x5   :  { %33 = dma.hbm_to_vmem [thread:$0]  %s26_s26, 512, %s28_s28, [#allocation3], %s307_s9, %s307_s9, %s308_s10  }
   0x6   :  { %s309_s11 = smov [#allocation5]  }
   0x7   :  { %s42_s12 = sshll.u32 %s309_s11, 4  ;;  %s43_s12 = int_to_ptr.vmem [resolvable:$true] %s42_s12 }
   0x8   :  { %48 = dma.hbm_to_vmem [thread:$0]  %s41_s8, 512, %s43_s12, [#allocation6], %s307_s9, %s307_s9, %s308_s10  }
   0x9   :  { %300 = dma.done.wait [#allocation3], 512  }
   0xa   :  { %301 = vsyncadd [#allocation3], 4294966784 }
   0xb   :  { %302 = dma.done.wait [#allocation6], 512  }
   0xc   :  { %303 = vsyncadd [#allocation6], 4294966784  ;;  %vm73_vm0 = vcmask 1045504   ;;  %vm66_vm1 = vcmask 48128   ;;  %v61_v0 = vld [vmem:[%s392_s1] sm:$0x3f] }
   0xd   :  { %v59_v1 = vld [vmem:[%s391_s0] sm:$0xff]  ;;  %201 = vmatpush.msk.msra.mxu0 %vm73_vm0, %v61_v0  ;;  %v60_v2 = vld [vmem:[%s391_s0 + $0x8] sm:$0xff]  ;;  %v105_v3 = vld [vmem:[#allocation2 + $0x18] sm:$0xff]  ;;  %vm110_vm2 = vcmask 261120   ;;  %s187_s23 = sshll.u32 %s398_s7, 4  ;;  %s188_s23 = int_to_ptr.hbm [resolvable:$true] %s187_s23 }
   0xe   :  { %202 = vmatmul.msk.f32.vlgmr.msra.gmra.mxu0 %vm66_vm1, %v59_v1  ;;  %129 = vmatpush.msra.mxu1 %v105_v3  ;;  %v104_v4 = vld [vmem:[#allocation2 + $0x10] sm:$0xff]  ;;  %v103_v5 = vld [vmem:[#allocation2 + $0x8] sm:$0xff]  ;;  %v102_v6 = vld [vmem:[#allocation2] sm:$0xff] }
   0xf   :  { %208 = vmatpush.msra.mxu3 %v105_v3  ;;  %v217_v7 = vld [vmem:[%s393_s2] ss:$0 sm:$0xff]  ;;  %v145_v14 = vld [vmem:[#allocation5 + $0x18] sm:$0xff]  ;;  %v144_v15 = vld [vmem:[#allocation5 + $0x10] sm:$0xff] }
  0x10   :  { %130 = vmatpush.msra.mxu1 %v104_v4  ;;  %168 = vmatpush.msra.mxu2 %v145_v14  ;;  %v143_v16 = vld [vmem:[#allocation5 + $0x8] sm:$0xff]  ;;  %v142_v17 = vld [vmem:[#allocation5] sm:$0xff] }
  0x11   :  { %209 = vmatpush.msra.mxu3 %v104_v4  ;;  %v218_v18 = vld [vmem:[%s395_s4] ss:$0 sm:$0xff]  ;;  %s310_s4 = smov [#allocation7]  }
  0x12   :  { %131 = vmatpush.msra.mxu1 %v103_v5  ;;  %169 = vmatpush.msra.mxu2 %v144_v15  ;;  %v219_v25 = vld [vmem:[%s397_s6] ss:$0 sm:$0xff]  ;;  %s185_s20 = sshll.u32 %s310_s4, 4  ;;  %s186_s20 = int_to_ptr.vmem [resolvable:$true] %s185_s20 }
  0x13   :  { %210 = vmatpush.msra.mxu3 %v103_v5 }
  0x14   :  { %132 = vmatpush.msra.mxu1 %v102_v6  ;;  %170 = vmatpush.msra.mxu2 %v143_v16 }
  0x15   :  { %211 = vmatpush.msra.mxu3 %v102_v6 }
  0x16   :  { %203 = vmatmul.msk.f32.gmra.mxu0 %vm66_vm1, %v60_v2  ;;  %171 = vmatpush.msra.mxu2 %v142_v17 }
  0x8b   :  { %v94_v8 = vpop.f32.mrf.mxu0 }
  0x8c   :  { %v95_v9 = vadd.f32 %v217_v7, %v94_v8 }
  0x8e   :  { %220 = vtanh.f32 %v95_v9 }
  0x93   :  { %v97_v10 = vpop.f32.mrf.mxu0 }
  0x94   :  { %v221_v11 = vpop.eup %220  ;;  %v98_v12 = vadd.f32 %v217_v7, %v97_v10 }
  0x95   :  { %204 = vmatmul.msk.f32.vlgmr.msra.gmra.mxu1 %vm110_vm2, %v221_v11 }
  0x96   :  { %222 = vtanh.f32 %v98_v12 }
  0x9c   :  { %v223_v13 = vpop.eup %222 }
  0x9d   :  { %205 = vmatmul.msk.f32.vlgmr.msra.gmra.mxu3 %vm110_vm2, %v223_v13 }
 0x112   :  { %v134_v19 = vpop.f32.mrf.mxu1 }
 0x113   :  { %v135_v20 = vadd.f32 %v218_v18, %v134_v19 }
 0x115   :  { %224 = vtanh.f32 %v135_v20 }
 0x11b   :  { %v225_v21 = vpop.eup %224 }
 0x11c   :  { %206 = vmatmul.msk.f32.vlgmr.msra.gmra.mxu2 %vm110_vm2, %v225_v21 }
 0x120   :  { %v137_v22 = vpop.f32.mrf.mxu3 }
 0x121   :  { %v138_v23 = vadd.f32 %v218_v18, %v137_v22 }
 0x123   :  { %226 = vtanh.f32 %v138_v23 }
 0x129   :  { %v227_v24 = vpop.eup %226 }
 0x12a   :  { %207 = vmatmul.msk.f32.gmra.mxu2 %vm110_vm2, %v227_v24 }
 0x19f   :  { %v173_v26 = vpop.f32.mrf.mxu2 }
 0x1a0   :  { %v174_v27 = vadd.f32 %v219_v25, %v173_v26 }
 0x1a2   :  { %179 = vst [vmem:[#allocation7] sm:$0xff] %v174_v27 }
 0x1ad   :  { %v176_v28 = vpop.f32.mrf.mxu2 }
 0x1ae   :  { %v177_v29 = vadd.f32 %v219_v25, %v176_v28 }
 0x1b0   :  { %180 = vst [vmem:[#allocation7 + $0x8] sm:$0xff] %v177_v29 }
 0x1b1   :  { %193 = dma.vmem_to_hbm [thread:$0]  %s186_s20, 256, %s188_s23, [#allocation4], %s307_s9, %s307_s9, %s308_s10  }
 0x1b2   :  { %304 = dma.done.wait [#allocation4], 256  }
 0x1b3   :  { %305 = vsyncadd [#allocation4], 4294967040 }
 0x1b4   :  { %198 = vsyncpa [#allocation3], 1 }
 0x1b5   :  { %199 = vsyncpa [#allocation6], 1 }
 0x1b6   :  { %200 = vsyncpa [#allocation4], 1 }

</bundles_post_ra>
